<compile_context>
chip_gen: v5e
topology: v5e:2x2
jax: 0.10.0
libtpu: 0.0.40
codegen_flags: <defaults>
</compile_context>

<pallas_src>
import jax
import jax.numpy as jnp
import numpy as np
from jax.experimental import pallas as pl
from jax.experimental.pallas import tpu as pltpu

_LANE = 128            # TPU lane width
_SUBLANE_BF16 = 16     # bf16 sublane tile (rows per vreg)
_MAX_LANE_TILE = 2048  # cap per-step lane tile; keeps VMEM blocks small at big shapes


def _round_up(x, m):
    return (x + m - 1) // m * m


def _pick_lane_tile(nhwp):
    """Largest multiple-of-128 tile that divides nhwp and is <= _MAX_LANE_TILE."""
    m = nhwp // _LANE
    for d in range(min(m, _MAX_LANE_TILE // _LANE), 0, -1):
        if m % d == 0:
            return d * _LANE
    return _LANE


def _conv_block_kernel(p_ref, w_ref, b_ref, o_ref):
    """One grid step == one lane tile of the batch-merged GEMM.

    p_ref : (KKCP, T)    im2col patches (zero-padded K rows), bf16; lanes = n*HW + hw
    w_ref : (COUT, KKCP) reshaped + zero-padded filter, bf16
    b_ref : (COUT, 1)    bias, f32
    o_ref : (COUT, T)    output tile, f32 (channel-major)
    """
    acc = jnp.dot(w_ref[...], p_ref[...], preferred_element_type=jnp.float32)  # (COUT, T) f32
    o_ref[...] = jnp.maximum(acc + b_ref[...], 0.0).astype(o_ref.dtype)        # bias + ReLU in f32


def conv2d_block_forward(x_nchw, weight, bias, *, stride, padding, dilation=1):
    """Pallas implementation of Conv2dBlock.forward (norm='none', act='relu', pad='zero').

    x_nchw : (N, Cin, H, W)   float32
    weight : (Cout, Cin, KH, KW)
    bias   : (Cout,)
    returns: (N, Cout, Ho, Wo) float32
    """
    N, CIN, H, W = x_nchw.shape
    COUT, _, KH, KW = weight.shape
    SH = SW = int(stride)
    DH = DW = int(dilation)
    P = int(padding)

    Hp, Wp = H + 2 * P, W + 2 * P
    HO = (Hp - DH * (KH - 1) - 1) // SH + 1
    WO = (Wp - DW * (KW - 1) - 1) // SW + 1
    KKC = KH * KW * CIN
    HW = HO * WO
    NHW = N * HW

    # Padded sizes: K aligned to the bf16 sublane tile, lane axis aligned to 128.
    KKCP = _round_up(KKC, _SUBLANE_BF16)
    NHWP = _round_up(NHW, _LANE)

    # --- wrapper glue: cast to bf16 FIRST, then ZeroPad2d + im2col (tap-major, then Cin,
    # batch folded into the lane axis). Strides/dilations handled here so the kernel never
    # does strided value slices. Tiny tensors; XLA fuses pad with the strided slices.
    x_bf = x_nchw.astype(jnp.bfloat16)
    x_pad = jnp.pad(x_bf, ((0, 0), (0, 0), (P, P), (P, P)))
    x_t = jnp.transpose(x_pad, (1, 0, 2, 3))                     # (Cin, N, Hp, Wp)
    taps = [
        x_t[:, :, kh * DH:kh * DH + SH * HO:SH, kw * DW:kw * DW + SW * WO:SW]
        for kh in range(KH) for kw in range(KW)
    ]                                                            # each (Cin, N, Ho, Wo)
    patches = jnp.stack(taps, axis=0)                            # (KH*KW, Cin, N, Ho, Wo)
    patches = patches.reshape(KKC, NHW)                          # row = (kh*KW+kw)*Cin + cin
    patches = jnp.pad(patches, ((0, KKCP - KKC), (0, NHWP - NHW)))   # zero taps: free

    # Filter flattened to match patch row ordering, then zero-padded along K.
    w2d = jnp.transpose(weight, (0, 2, 3, 1)).reshape(COUT, KKC).astype(jnp.bfloat16)
    w2d = jnp.pad(w2d, ((0, 0), (0, KKCP - KKC)))                # (COUT, KKCP)
    b2d = bias.reshape(COUT, 1).astype(jnp.float32)

    tile_hw = _pick_lane_tile(NHWP)
    grid = (NHWP // tile_hw,)

    cost = pl.CostEstimate(
        flops=2 * COUT * KKCP * NHWP,
        transcendentals=0,
        bytes_accessed=int(2 * KKCP * NHWP + 2 * COUT * KKCP + 4 * COUT + 4 * COUT * NHWP),
    )

    out2d = pl.pallas_call(
        _conv_block_kernel,
        out_shape=jax.ShapeDtypeStruct((COUT, NHWP), jnp.float32),
        grid_spec=pltpu.PrefetchScalarGridSpec(
            num_scalar_prefetch=0,
            grid=grid,
            in_specs=[
                pl.BlockSpec((KKCP, tile_hw), lambda j: (0, j)),
                pl.BlockSpec((COUT, KKCP), lambda j: (0, 0)),
                pl.BlockSpec((COUT, 1), lambda j: (0, 0)),
            ],
            out_specs=pl.BlockSpec((COUT, tile_hw), lambda j: (0, j)),
        ),
        compiler_params=pltpu.CompilerParams(
            # Lane tiles are independent; no assumption that this shards across TCs.
            dimension_semantics=("parallel",)),
        cost_estimate=cost,
    )(patches, w2d, b2d)

    # (COUT, N*HW) -> (N, COUT, Ho, Wo); tiny (<=16 KiB) transpose handled by XLA.
    out = out2d[:, :NHW].reshape(COUT, N, HO, WO)
    return jnp.transpose(out, (1, 0, 2, 3))


def _reference_forward(x_nchw, weight, bias, *, stride, padding, dilation=1,
                       operand_dtype=jnp.float32):
    """Pure-JAX reference (torch semantics). operand_dtype lets us compare against a
    same-precision (bf16-operand, f32-accumulate) reference for the mixed-precision kernel."""
    y = jax.lax.conv_general_dilated(
        x_nchw.astype(operand_dtype), weight.astype(operand_dtype),
        window_strides=(stride, stride),
        padding=[(padding, padding), (padding, padding)],
        rhs_dilation=(dilation, dilation),
        dimension_numbers=("NCHW", "OIHW", "NCHW"),
        preferred_element_type=jnp.float32)
    y = y + bias.reshape(1, -1, 1, 1).astype(jnp.float32)
    return jnp.maximum(y, 0.0)


if __name__ == "__main__":
    # Conv2dBlock(input_dim=4, output_dim=8, kernel_size=3, stride=1, padding=1,
    #             norm='none', activation='relu', pad_type='zero')
    N, CIN, H, W = 2, 4, 16, 16
    COUT, K = 8, 3

    key = jax.random.PRNGKey(0)
    kx, kw, kb = jax.random.split(key, 3)

    x = jax.random.normal(kx, (N, CIN, H, W), dtype=jnp.float32)
    fan_in = CIN * K * K
    bound = 1.0 / np.sqrt(fan_in)
    weight = jax.random.uniform(kw, (COUT, CIN, K, K), jnp.float32, -bound, bound)
    bias = jax.random.uniform(kb, (COUT,), jnp.float32, -bound, bound)

    # Primary config: stride=1, padding=1  (lane axis = N*HW = 512).
    out = conv2d_block_forward(x, weight, bias, stride=1, padding=1)
    out = jax.block_until_ready(out)
    # Same-precision reference (bf16 operands, f32 accumulation) -> tight tolerance.
    ref = _reference_forward(x, weight, bias, stride=1, padding=1,
                             operand_dtype=jnp.bfloat16)
    np.testing.assert_allclose(np.asarray(out), np.asarray(ref), rtol=1e-3, atol=1e-3)
    # Fidelity check against the full-f32 module semantics (bf16 input rounding only).
    ref_f32 = _reference_forward(x, weight, bias, stride=1, padding=1)
    np.testing.assert_allclose(np.asarray(out), np.asarray(ref_f32), rtol=5e-2, atol=5e-2)

    # Secondary config: stride=2  (lane axis = N*HW = 128: full-lane, unmasked stores).
    out2 = conv2d_block_forward(x, weight, bias, stride=2, padding=1)
    out2 = jax.block_until_ready(out2)
    ref2 = _reference_forward(x, weight, bias, stride=2, padding=1,
                              operand_dtype=jnp.bfloat16)
    np.testing.assert_allclose(np.asarray(out2), np.asarray(ref2), rtol=1e-3, atol=1e-3)

    print("KERNEL_OK")
</pallas_src>

<mosaic_0001>
module attributes {stable_mosaic.version = 11 : i64} {
  func.func @_conv_block_kernel(%arg0: i32, %arg1: memref<48x512xbf16, #tpu.memory_space<vmem>>, %arg2: memref<8x48xbf16, #tpu.memory_space<vmem>>, %arg3: memref<8x1xf32, #tpu.memory_space<vmem>>, %arg4: memref<8x512xf32, #tpu.memory_space<vmem>>) attributes {dimension_semantics = [#tpu.dimension_semantics<parallel>], iteration_bounds = array<i64: 1>, scalar_prefetch = 0 : i64, scratch_operands = 0 : i64, tpu.core_type = #tpu.core_type<tc>, window_params = [{transform_indices = @transform_0, window_bounds = array<i64: 48, 512>}, {pipeline_mode = #tpu.pipeline_mode<synchronous>, transform_indices = @transform_1, window_bounds = array<i64: 8, 48>}, {pipeline_mode = #tpu.pipeline_mode<synchronous>, transform_indices = @transform_2, window_bounds = array<i64: 8, 1>}, {transform_indices = @transform_3, window_bounds = array<i64: 8, 512>}]} {
    %c0 = arith.constant 0 : index
    %c0_0 = arith.constant 0 : index
    %0 = vector.load %arg2[%c0, %c0_0] : memref<8x48xbf16, #tpu.memory_space<vmem>>, vector<8x48xbf16>
    %c0_1 = arith.constant 0 : index
    %c0_2 = arith.constant 0 : index
    %1 = vector.load %arg1[%c0_1, %c0_2] : memref<48x512xbf16, #tpu.memory_space<vmem>>, vector<48x512xbf16>
    %cst = arith.constant dense<0.000000e+00> : vector<8x512xf32>
    %2 = tpu.matmul %0, %1, %cst {dimension_numbers = #tpu.dot_dimension_numbers<[1], [0], [0], [1], [0, 0, 1, 1], [], []>} : vector<8x48xbf16>, vector<48x512xbf16>, vector<8x512xf32> -> vector<8x512xf32>
    %c0_3 = arith.constant 0 : index
    %c0_4 = arith.constant 0 : index
    %3 = vector.load %arg3[%c0_3, %c0_4] : memref<8x1xf32, #tpu.memory_space<vmem>>, vector<8x1xf32>
    %4 = vector.broadcast %3 : vector<8x1xf32> to vector<8x512xf32>
    %5 = arith.addf %2, %4 : vector<8x512xf32>
    %cst_5 = arith.constant 0.000000e+00 : f32
    %6 = vector.broadcast %cst_5 : f32 to vector<8x512xf32>
    %7 = arith.maximumf %5, %6 : vector<8x512xf32>
    %c0_6 = arith.constant 0 : index
    %c0_7 = arith.constant 0 : index
    %8 = vector.load %arg4[%c0_6, %c0_7] : memref<8x512xf32, #tpu.memory_space<vmem>>, vector<8x512xf32>
    tpu.vector_store %arg4[%c0_6, %c0_7], %7 {strides = array<i32>} : memref<8x512xf32, #tpu.memory_space<vmem>>, vector<8x512xf32>,
    return
  }
  func.func @transform_0(%arg0: i32) -> (i32, i32) {
    %c0_i32 = arith.constant 0 : i32
    %c0_i32_0 = arith.constant 0 : i32
    return %c0_i32, %arg0 : i32, i32
  }
  func.func @transform_1(%arg0: i32) -> (i32, i32) {
    %c0_i32 = arith.constant 0 : i32
    %c0_i32_0 = arith.constant 0 : i32
    %c0_i32_1 = arith.constant 0 : i32
    return %c0_i32, %c0_i32_0 : i32, i32
  }
  func.func @transform_2(%arg0: i32) -> (i32, i32) {
    %c0_i32 = arith.constant 0 : i32
    %c0_i32_0 = arith.constant 0 : i32
    %c0_i32_1 = arith.constant 0 : i32
    return %c0_i32, %c0_i32_0 : i32, i32
  }
  func.func @transform_3(%arg0: i32) -> (i32, i32) {
    %c0_i32 = arith.constant 0 : i32
    %c0_i32_0 = arith.constant 0 : i32
    return %c0_i32, %arg0 : i32, i32
  }
}

</mosaic_0001>

<bundles_post_ra>
// kernel: tpu_custom_call.1
= control target key start
LH: loop header
LB: loop body
LE: loop exit
PB: predicated region body
PF: predicated region fallthrough
CT: control target
= control target key end

     0   :  { %8 = vsyncpa [#allocation3], 0  ;;  %s351_s0 = inlined_call_operand.hbm [shape: bf16[48,512], index: 0, kind: input, shape index: {}]   ;;  %s352_s1 = inlined_call_operand.vmem [shape: bf16[8,48], index: 1, kind: input, shape index: {}]   ;;  %s353_s2 = inlined_call_operand.vmem [shape: f32[8,1], index: 2, kind: input, shape index: {}]   ;;  %s354_s3 = inlined_call_operand.hbm [shape: f32[8,512], index: 3, kind: output, shape index: {}]  }
   0x1   :  { %9 = vsyncpa [#allocation4], 0  ;;  %s14_s14 = sshll.u32 %s351_s0, 4  ;;  %s314_s15 = smov [#allocation2]   ;;  %s15_s14 = int_to_ptr.hbm [resolvable:$true] %s14_s14 }
   0x2   :  { %s16_s16 = sshll.u32 %s314_s15, 4  ;;  %s315_s17 = smov 256   ;;  %s17_s16 = int_to_ptr.vmem [resolvable:$true] %s16_s16 }
   0x3   :  { %s316_s18 = smov 16  }
   0x4   :  { %22 = dma.hbm_to_vmem [thread:$0]  %s15_s14, 1536, %s17_s16, [#allocation3], %s315_s17, %s315_s17, %s316_s18  }
   0x5   :  { %310 = dma.done.wait [#allocation3], 1536  }
   0x6   :  { %311 = vsyncadd [#allocation3], 4294965760  ;;  %v317_v0 = vmov 0   ;;  %v226_v1 = vld [vmem:[#allocation2 + $0x40] sm:$0xf]  ;;  %vm111_vm0 = vcmask 392192  }
   0x7   :  { %261 = vset.pattern.permute.xlu0 %v317_v0  ;;  %v254_v2 = vld [vmem:[#allocation2 + $0x4c] sm:$0xf0]  ;;  %v252_v3 = vld [vmem:[#allocation2 + $0x44] sm:$0xf]  ;;  %v228_v5 = vld [vmem:[#allocation2 + $0x50] sm:$0xf0] }
   0x8   :  { %v227_v4 = vor.u32 %v254_v2, %v226_v1  ;;  %v234_v6 = vld [vmem:[#allocation2 + $0x48] sm:$0xf]  ;;  %v255_v7 = vld [vmem:[#allocation2 + $0x54] sm:$0xf0]  ;;  %v231_v8 = vor.u32 %v252_v3, %v228_v5  ;;  %v253_v10 = vld [vmem:[#allocation2 + $0x4c] sm:$0xf] }
   0x9   :  { %v235_v9 = vor.u32 %v255_v7, %v234_v6  ;;  %v236_v11 = vld [vmem:[#allocation2 + $0x58] sm:$0xf0]  ;;  %v210_v12 = vld [vmem:[#allocation2 + $0x20] sm:$0xf]  ;;  %v250_v14 = vld [vmem:[#allocation2 + $0x2c] sm:$0xf0] }
   0xa   :  { %120 = vmatpush.bf16.msra.mxu0 %v227_v4  ;;  %v239_v13 = vor.u32 %v253_v10, %v236_v11  ;;  %v248_v15 = vld [vmem:[#allocation2 + $0x24] sm:$0xf]  ;;  %v212_v16 = vld [vmem:[#allocation2 + $0x30] sm:$0xf0]  ;;  %133 = vmatpush.bf16.msra.mxu1 %v231_v8  ;;  %v211_v17 = vor.u32 %v250_v14, %v210_v12  ;;  %v218_v19 = vld [vmem:[#allocation2 + $0x28] sm:$0xf] }
   0xb   :  { %146 = vmatpush.bf16.msra.mxu2 %v235_v9  ;;  %v215_v18 = vor.u32 %v248_v15, %v212_v16  ;;  %v251_v20 = vld [vmem:[#allocation2 + $0x34] sm:$0xf0]  ;;  %v249_v21 = vld [vmem:[#allocation2 + $0x2c] sm:$0xf]  ;;  %v220_v23 = vld [vmem:[#allocation2 + $0x38] sm:$0xf0] }
   0xc   :  { %159 = vmatpush.bf16.msra.mxu3 %v239_v13  ;;  %v219_v22 = vor.u32 %v251_v20, %v218_v19  ;;  %v194_v24 = vld [vmem:[#allocation2] sm:$0xf]  ;;  %v246_v25 = vld [vmem:[#allocation2 + $0xc] sm:$0xf0]  ;;  %v223_v26 = vor.u32 %v249_v21, %v220_v23  ;;  %v244_v27 = vld [vmem:[#allocation2 + $0x4] sm:$0xf] }
   0xd   :  { %v196_v28 = vld [vmem:[#allocation2 + $0x10] sm:$0xf0]  ;;  %v202_v29 = vld [vmem:[#allocation2 + $0x8] sm:$0xf]  ;;  %v195_v30 = vor.u32 %v246_v25, %v194_v24  ;;  %v247_v31 = vld [vmem:[#allocation2 + $0x14] sm:$0xf0] }
   0xe   :  { %121 = vmatpush.bf16.msra.mxu0 %v211_v17  ;;  %v245_v32 = vld [vmem:[#allocation2 + $0xc] sm:$0xf]  ;;  %v204_v33 = vld [vmem:[#allocation2 + $0x18] sm:$0xf0]  ;;  %134 = vmatpush.bf16.msra.mxu1 %v215_v18  ;;  %v199_v34 = vor.u32 %v244_v27, %v196_v28  ;;  %v203_v35 = vor.u32 %v247_v31, %v202_v29  ;;  %v45_v36 = vld [vmem:[%s353_s2] sm:$0xff]  ;;  %s182_s24 = sshll.u32 %s354_s3, 4  ;;  %s183_s24 = int_to_ptr.hbm [resolvable:$true] %s182_s24 }
   0xf   :  { %147 = vmatpush.bf16.msra.mxu2 %v219_v22  ;;  %v207_v37 = vor.u32 %v245_v32, %v204_v33  ;;  %48 = vperm.xlu0 %261, %v45_v36   ;;  %v32_v38 = vld [vmem:[%s352_s1] sm:$0xf]  ;;  %s318_s1 = smov [#allocation5]  }
  0x10   :  { %160 = vmatpush.bf16.msra.mxu3 %v223_v26  ;;  %s180_s2 = sshll.u32 %s318_s1, 4  ;;  %s181_s2 = int_to_ptr.vmem [resolvable:$true] %s180_s2 }
  0x12   :  { %122 = vmatpush.bf16.msra.mxu0 %v195_v30  ;;  %135 = vmatpush.bf16.msra.mxu1 %v199_v34 }
  0x13   :  { %148 = vmatpush.bf16.msra.mxu2 %v203_v35 }
  0x14   :  { %161 = vmatpush.bf16.msra.mxu3 %v207_v37 }
  0x15   :  { %240 = vmatmul.msk.bf16.vlgmr.msra.gmra.mxu0 %vm111_vm0, %v32_v38  ;;  %241 = vmatmul.msk.bf16.vlgmr.msra.gmra.mxu1 %vm111_vm0, %v32_v38 }
  0x16   :  { %242 = vmatmul.msk.bf16.vlgmr.msra.gmra.mxu2 %vm111_vm0, %v32_v38 }
  0x17   :  { %243 = vmatmul.msk.bf16.vlgmr.msra.gmra.mxu3 %vm111_vm0, %v32_v38 }
  0x81   :  { %v49_v39 = vpop.permute.xlu0 %48 }
  0x92   :  { %v124_v40 = vpop.f32.mrf.mxu0  ;;  %v137_v41 = vpop.f32.mrf.mxu1 }
  0x93   :  { %v125_v42 = vadd.f32 %v124_v40, %v49_v39  ;;  %v138_v43 = vadd.f32 %v137_v41, %v49_v39 }
  0x95   :  { %v167_v44 = vmax.f32 %v125_v42, 0.0  ;;  %v168_v45 = vmax.f32 %v138_v43, 0.0 }
  0x97   :  { %171 = vst [vmem:[#allocation5] sm:$0xff] %v167_v44 }
  0x98   :  { %172 = vst [vmem:[#allocation5 + $0x8] sm:$0xff] %v168_v45 }
  0x99   :  { %v150_v46 = vpop.f32.mrf.mxu2 }
  0x9a   :  { %v151_v47 = vadd.f32 %v150_v46, %v49_v39  ;;  %v163_v48 = vpop.f32.mrf.mxu3  ;;  %v126_v49 = vpop.f32.mrf.mxu0 }
  0x9b   :  { %v164_v50 = vadd.f32 %v163_v48, %v49_v39  ;;  %v139_v51 = vpop.f32.mrf.mxu1 }
  0x9c   :  { %v169_v52 = vmax.f32 %v151_v47, 0.0 }
  0x9d   :  { %v170_v53 = vmax.f32 %v164_v50, 0.0 }
  0x9e   :  { %173 = vst [vmem:[#allocation5 + $0x10] sm:$0xff] %v169_v52 }
  0x9f   :  { %174 = vst [vmem:[#allocation5 + $0x18] sm:$0xff] %v170_v53 }
  0xa0   :  { %185 = dma.vmem_to_hbm [thread:$0]  %s181_s2, 512, %s183_s24, [#allocation4]  }
  0xa1   :  { %v152_v54 = vpop.f32.mrf.mxu2 }
  0xa2   :  { %v165_v55 = vpop.f32.mrf.mxu3 }
  0xa3   :  { %312 = dma.done.wait [#allocation4], 512  }
  0xa4   :  { %313 = vsyncadd [#allocation4], 4294966784 }
  0xa5   :  { %190 = vsyncpa [#allocation3], 1 }
  0xa6   :  { %191 = vsyncpa [#allocation4], 1 }

</bundles_post_ra>
